<compile_context>
chip_gen: v7x
topology: tpu7x:2x2x1
jax: 0.10.0
libtpu: 0.0.40
codegen_flags: <defaults>
</compile_context>

<pallas_src>
import functools

import jax
import jax.numpy as jnp
from jax.experimental import pallas as pl
from jax.experimental.pallas import tpu as pltpu


def _round_up(v, m):
    return ((v + m - 1) // m) * m


def _fused_kernel(x_ref, wconv_ref, wfc_ref, oh_ref, sel_ref, o_ref):
    """conv(+bias) -> ELU -> (BN+pool+FC+bias, pre-folded) -> one-hot select."""
    # Temporal conv for the whole batch, conv bias folded via the ones column:
    # one bf16 MXU matmul with f32 accumulation.
    h = jnp.dot(x_ref[...], wconv_ref[...], preferred_element_type=jnp.float32)
    # ELU (alpha = 1) in f32.  exp argument clamped so the unselected branch
    # cannot overflow.  (expm1 would be marginally more accurate near 0-; exp
    # is used for guaranteed EUP lowering.)  Carrier column holds 1.0 (ELU(1)=1),
    # padding columns hold 0.0 (ELU(0)=0), so both stay inert.
    h = jnp.where(h > 0.0, h, jnp.exp(jnp.minimum(h, 0.0)) - 1.0)
    # BatchNorm(eval) + AvgPool + flatten + Linear, all folded into wfc; the
    # folded FC bias sits on the carrier row and is picked up automatically.
    fc = jnp.dot(h.astype(jnp.bfloat16), wfc_ref[...],
                 preferred_element_type=jnp.float32)
    # einsum('bi,bio->bo') subject selection: mask-multiply + one tiny static
    # matmul (padded lanes of fc/oh/sel are zero, so they contribute nothing).
    o_ref[...] = jnp.dot(fc * oh_ref[...], sel_ref[...],
                         preferred_element_type=jnp.float32)


def fold_params(params, *, n_chans, n_times, kernel_size, pool_size,
                num_subjects, n_outputs):
    """One-time folding of conv/BN/pool/FC into padded, bf16 MXU-ready matrices."""
    f32 = jnp.float32
    C = n_chans
    K = params["conv_w"].shape[0]               # num_kernels
    Td = n_times - 1                            # time after dropping the code sample
    Tc = Td - kernel_size + 1                   # conv output length (forward path)
    P = Tc // pool_size                         # pooled length actually produced
    S, O = num_subjects, n_outputs
    N = S * O
    CTd = C * Td
    KTc = K * Tc

    # If __init__'s conv_output_length disagreed with the forward-pass pooled
    # length, PyTorch's Linear would raise at runtime; fail loudly here.
    assert params["fc_w"].shape == (N, K * P), (
        "fc_w shape inconsistent with the forward-pass pooled length",
        params["fc_w"].shape, (N, K * P))

    # Lane-density padding targets (last dims multiples of 128).
    Kc_pad = _round_up(CTd + 1, 128)            # contraction dim (+1 ones column)
    KTc_pad = _round_up(KTc + 1, 128)           # conv-out dim (+1 carrier column)
    N_pad = _round_up(N, 128)
    O_pad = _round_up(O, 128)

    # ---- conv weight -> banded (Toeplitz) matrix --------------------------------
    # Wtoep[c*Td + tau, k*Tc + t] = conv_w[k, c, tau - t] if 0 <= tau-t < ks else 0
    cw = params["conv_w"].astype(f32)                                   # (K, C, ks)
    tau = jnp.arange(Td)[:, None]
    tt = jnp.arange(Tc)[None, :]
    d = tau - tt                                                        # (Td, Tc)
    valid = (d >= 0) & (d < kernel_size)
    w_g = cw[:, :, jnp.clip(d, 0, kernel_size - 1)]                     # (K, C, Td, Tc)
    w_g = jnp.where(valid[None, None], w_g, 0.0)
    w_band = jnp.transpose(w_g, (1, 2, 0, 3)).reshape(CTd, KTc)

    w_conv = jnp.zeros((Kc_pad, KTc_pad), f32)
    w_conv = w_conv.at[:CTd, :KTc].set(w_band)
    # conv bias folded: the x slab carries a ones column at row index CTd.
    w_conv = w_conv.at[CTd, :KTc].set(jnp.repeat(params["conv_b"].astype(f32), Tc))
    # constant-1 carrier column at col index KTc (ELU(1)=1) -> keys the FC bias row.
    w_conv = w_conv.at[CTd, KTc].set(1.0)

    # ---- fold eval BatchNorm + AvgPool (1/pool & windowing) + Linear ------------
    inv = params["bn_gamma"].astype(f32) * jax.lax.rsqrt(
        params["bn_var"].astype(f32) + 1e-5)                            # (K,)
    shift = params["bn_beta"].astype(f32) - params["bn_mean"].astype(f32) * inv
    fc_w3 = params["fc_w"].astype(f32).reshape(N, K, P)                 # fc_w[n, k*P+p]
    w_scaled = fc_w3 * (inv / pool_size)[None, :, None]                 # (N, K, P)
    w_time = jnp.repeat(w_scaled, pool_size, axis=2)                    # (N, K, P*pool)
    pad_t = Tc - P * pool_size
    if pad_t > 0:   # tail time-steps dropped by the floor pooling
        w_time = jnp.concatenate([w_time, jnp.zeros((N, K, pad_t), f32)], axis=2)
    w_fc_core = jnp.transpose(w_time, (1, 2, 0)).reshape(KTc, N)        # (K*Tc, N)
    fc_bias = (params["fc_b"].astype(f32)
               + jnp.einsum("nkp,k->n", fc_w3, shift))                  # (N,)

    w_fc = jnp.zeros((KTc_pad, N_pad), f32)
    w_fc = w_fc.at[:KTc, :N].set(w_fc_core)
    w_fc = w_fc.at[KTc, :N].set(fc_bias)       # FC bias rides on the carrier row

    # ---- static one-hot -> output selection matrix ------------------------------
    n_idx = jnp.arange(N)
    sel = jnp.zeros((N_pad, O_pad), f32).at[n_idx, n_idx % O].set(1.0)

    return {
        "w_conv": w_conv.astype(jnp.bfloat16),
        "w_fc": w_fc.astype(jnp.bfloat16),
        "sel": sel,
        "dims": dict(Td=Td, Tc=Tc, P=P, CTd=CTd, KTc=KTc, K=K, C=C, S=S, O=O,
                     N=N, Kc_pad=Kc_pad, KTc_pad=KTc_pad, N_pad=N_pad,
                     O_pad=O_pad),
    }


def subject_onehot_forward(x, folded):
    """Per-call forward: subject-id decode + one-hot mask + fused Pallas kernel."""
    dims = folded["dims"]
    f32 = jnp.float32
    B, C, T = x.shape
    x = x.astype(f32)
    Td, CTd = dims["Td"], dims["CTd"]
    S, O, N = dims["S"], dims["O"], dims["N"]

    # Subject-id decode from the RAW f32 input (must NOT go through bf16).
    sid = jnp.floor(x[:, 0, T - 1] / 1000000.0).astype(jnp.int32) - 1   # (B,)
    onehot = (jnp.arange(S, dtype=jnp.int32)[None, :] == sid[:, None]).astype(f32)
    oh = jnp.repeat(onehot, O, axis=1)                                  # (B, N)

    # Batch padded to a bf16 sublane multiple (16); padded rows are all-zero and
    # sliced off after the call.
    B_pad = _round_up(max(B, 16), 16)
    oh_pad = jnp.zeros((B_pad, dims["N_pad"]), f32).at[:B, :N].set(oh)

    # Input as one flat (B_pad, Kc_pad) slab: code sample dropped, ones column
    # (conv-bias carrier) at index CTd, zero padding to the 128-lane boundary.
    x_flat = x[:, :, :Td].reshape(B, CTd)
    x_pad = jnp.zeros((B_pad, dims["Kc_pad"]), f32)
    x_pad = x_pad.at[:B, :CTd].set(x_flat)
    x_pad = x_pad.at[:B, CTd].set(1.0)
    x_bf = x_pad.astype(jnp.bfloat16)

    flops = 2 * B_pad * (dims["Kc_pad"] * dims["KTc_pad"]
                         + dims["KTc_pad"] * dims["N_pad"]
                         + dims["N_pad"] * dims["O_pad"])
    bytes_accessed = (x_bf.size * 2 + folded["w_conv"].size * 2
                      + folded["w_fc"].size * 2 + oh_pad.size * 4
                      + folded["sel"].size * 4 + B_pad * dims["O_pad"] * 4)

    vmem = pl.BlockSpec(memory_space=pltpu.MemorySpace.VMEM)
    out_full = pl.pallas_call(
        _fused_kernel,
        out_shape=jax.ShapeDtypeStruct((B_pad, dims["O_pad"]), f32),
        in_specs=[vmem] * 5,
        out_specs=vmem,
        compiler_params=pltpu.CompilerParams(
            vmem_limit_bytes=32 * 1024 * 1024),   # explicit (v5e default is 16 MiB)
        cost_estimate=pl.CostEstimate(
            flops=int(flops),
            transcendentals=int(B_pad * dims["KTc_pad"]),
            bytes_accessed=int(bytes_accessed)),
    )(x_bf, folded["w_conv"], folded["w_fc"], oh_pad, folded["sel"])
    return out_full[:B, :O]


def reference_forward(x, params, *, kernel_size, pool_size, num_subjects,
                      n_outputs):
    """Pure-JAX f32 reference matching the PyTorch forward (eval mode)."""
    B, C, T = x.shape
    K = params["conv_w"].shape[0]
    sid = jnp.floor(x[:, 0, -1] / 1000000.0).astype(jnp.int32) - 1
    xd = x[:, :, :-1]
    Td = T - 1
    Tc = Td - kernel_size + 1
    h = jnp.zeros((B, K, Tc), jnp.float32)
    for j in range(kernel_size):
        h = h + jnp.einsum("bct,kc->bkt", xd[:, :, j:j + Tc],
                           params["conv_w"][:, :, j])
    h = h + params["conv_b"][None, :, None]
    h = jnp.where(h > 0, h, jnp.exp(jnp.minimum(h, 0.0)) - 1.0)
    inv = params["bn_gamma"] / jnp.sqrt(params["bn_var"] + 1e-5)
    h = (h - params["bn_mean"][None, :, None]) * inv[None, :, None] \
        + params["bn_beta"][None, :, None]
    P = Tc // pool_size
    pooled = h[:, :, :P * pool_size].reshape(B, K, P, pool_size).mean(-1)
    flat = pooled.reshape(B, K * P)
    fc = flat @ params["fc_w"].T + params["fc_b"]
    fc3 = fc.reshape(B, num_subjects, n_outputs)
    onehot = jax.nn.one_hot(sid, num_subjects, dtype=jnp.float32)
    return jnp.einsum("bs,bso->bo", onehot, fc3)


if __name__ == "__main__":
    # Small, self-consistent configuration.
    B, C, T = 2, 4, 17                 # batch, n_chans, n_times (last sample = code)
    K = 8                              # num_kernels
    KS = 5                             # kernel_size
    POOL = 4                           # pool_size
    S = 4                              # num_subjects
    O = 3                              # n_outputs
    P = (T - KS + 1) // POOL           # conv_output_length as in __init__ (== (T-1-KS+1)//POOL here)
    F = K * P                          # fc input features
    N = S * O

    key = jax.random.PRNGKey(0)
    k = jax.random.split(key, 9)
    params = {
        "conv_w": 0.1 * jax.random.normal(k[0], (K, C, KS), jnp.float32),
        "conv_b": 0.1 * jax.random.normal(k[1], (K,), jnp.float32),
        "bn_gamma": 1.0 + 0.1 * jax.random.normal(k[2], (K,), jnp.float32),
        "bn_beta": 0.1 * jax.random.normal(k[3], (K,), jnp.float32),
        "bn_mean": 0.1 * jax.random.normal(k[4], (K,), jnp.float32),
        "bn_var": jax.random.uniform(k[5], (K,), jnp.float32, 0.5, 1.5),
        "fc_w": 0.1 * jax.random.normal(k[6], (N, F), jnp.float32),
        "fc_b": 0.1 * jax.random.normal(k[7], (N,), jnp.float32),
    }

    # Input: random signal; channel 0's last time sample encodes subject id * 1e6.
    x = jax.random.normal(k[8], (B, C, T), jnp.float32)
    subject_ids_1based = jnp.array([2.0, 4.0], jnp.float32)     # subjects 2 and 4
    x = x.at[:, 0, -1].set(subject_ids_1based * 1e6)

    # Weight folding hoisted: done once per parameter set, reused across calls.
    folded = fold_params(params, n_chans=C, n_times=T, kernel_size=KS,
                         pool_size=POOL, num_subjects=S, n_outputs=O)

    out = jax.block_until_ready(subject_onehot_forward(x, folded))

    ref = reference_forward(x, params, kernel_size=KS, pool_size=POOL,
                            num_subjects=S, n_outputs=O)
    assert out.shape == (B, O), out.shape
    # bf16 MXU operands (f32 accumulation) -> relaxed tolerance vs the f32 reference.
    assert jnp.allclose(out, ref, rtol=2e-2, atol=2e-2), (out, ref)
    print("KERNEL_OK")
</pallas_src>

<mosaic_0001>
module attributes {stable_mosaic.version = 11 : i64} {
  func.func @_fused_kernel(%arg0: memref<16x128xbf16, #tpu.memory_space<vmem>>, %arg1: memref<128x128xbf16, #tpu.memory_space<vmem>>, %arg2: memref<128x128xbf16, #tpu.memory_space<vmem>>, %arg3: memref<16x128xf32, #tpu.memory_space<vmem>>, %arg4: memref<128x128xf32, #tpu.memory_space<vmem>>, %arg5: memref<16x128xf32, #tpu.memory_space<vmem>>) attributes {dimension_semantics = [], scalar_prefetch = 0 : i64, scratch_operands = 0 : i64, tpu.core_type = #tpu.core_type<tc>} {
    %c0 = arith.constant 0 : index
    %c0_0 = arith.constant 0 : index
    %0 = vector.load %arg0[%c0, %c0_0] : memref<16x128xbf16, #tpu.memory_space<vmem>>, vector<16x128xbf16>
    %c0_1 = arith.constant 0 : index
    %c0_2 = arith.constant 0 : index
    %1 = vector.load %arg1[%c0_1, %c0_2] : memref<128x128xbf16, #tpu.memory_space<vmem>>, vector<128x128xbf16>
    %cst = arith.constant dense<0.000000e+00> : vector<16x128xf32>
    %2 = tpu.matmul %0, %1, %cst {dimension_numbers = #tpu.dot_dimension_numbers<[1], [0], [0], [1], [0, 0, 1, 1], [], []>} : vector<16x128xbf16>, vector<128x128xbf16>, vector<16x128xf32> -> vector<16x128xf32>
    %cst_3 = arith.constant 0.000000e+00 : f32
    %3 = vector.broadcast %cst_3 : f32 to vector<16x128xf32>
    %4 = arith.cmpf ogt, %2, %3 : vector<16x128xf32>
    %cst_4 = arith.constant 0.000000e+00 : f32
    %5 = vector.broadcast %cst_4 : f32 to vector<16x128xf32>
    %6 = arith.minimumf %2, %5 : vector<16x128xf32>
    %7 = math.exp %6 : vector<16x128xf32>
    %cst_5 = arith.constant 1.000000e+00 : f32
    %8 = vector.broadcast %cst_5 : f32 to vector<16x128xf32>
    %9 = arith.subf %7, %8 : vector<16x128xf32>
    %10 = arith.select %4, %2, %9 : vector<16x128xi1>, vector<16x128xf32>
    %11 = arith.truncf %10 : vector<16x128xf32> to vector<16x128xbf16>
    %c0_6 = arith.constant 0 : index
    %c0_7 = arith.constant 0 : index
    %12 = vector.load %arg2[%c0_6, %c0_7] : memref<128x128xbf16, #tpu.memory_space<vmem>>, vector<128x128xbf16>
    %cst_8 = arith.constant dense<0.000000e+00> : vector<16x128xf32>
    %13 = tpu.matmul %11, %12, %cst_8 {dimension_numbers = #tpu.dot_dimension_numbers<[1], [0], [0], [1], [0, 0, 1, 1], [], []>} : vector<16x128xbf16>, vector<128x128xbf16>, vector<16x128xf32> -> vector<16x128xf32>
    %c0_9 = arith.constant 0 : index
    %c0_10 = arith.constant 0 : index
    %14 = vector.load %arg3[%c0_9, %c0_10] : memref<16x128xf32, #tpu.memory_space<vmem>>, vector<16x128xf32>
    %15 = arith.mulf %13, %14 : vector<16x128xf32>
    %c0_11 = arith.constant 0 : index
    %c0_12 = arith.constant 0 : index
    %16 = vector.load %arg4[%c0_11, %c0_12] : memref<128x128xf32, #tpu.memory_space<vmem>>, vector<128x128xf32>
    %cst_13 = arith.constant dense<0.000000e+00> : vector<16x128xf32>
    %17 = tpu.matmul %15, %16, %cst_13 {dimension_numbers = #tpu.dot_dimension_numbers<[1], [0], [0], [1], [0, 0, 1, 1], [], []>} : vector<16x128xf32>, vector<128x128xf32>, vector<16x128xf32> -> vector<16x128xf32>
    %c0_14 = arith.constant 0 : index
    %c0_15 = arith.constant 0 : index
    %18 = vector.load %arg5[%c0_14, %c0_15] : memref<16x128xf32, #tpu.memory_space<vmem>>, vector<16x128xf32>
    tpu.vector_store %arg5[%c0_14, %c0_15], %17 {strides = array<i32>} : memref<16x128xf32, #tpu.memory_space<vmem>>, vector<16x128xf32>,
    return
  }
}

</mosaic_0001>

<bundles_post_ra>
// kernel: tpu_custom_call.1
= control target key start
LH: loop header
LB: loop body
LE: loop exit
PB: predicated region body
PF: predicated region fallthrough
CT: control target
= control target key end

     0   :  { %10 = vsyncpa [#allocation3], 0  ;;  %s918_s0 = inlined_call_operand.hbm [shape: bf16[16,128], index: 0, kind: input, shape index: {}]   ;;  %s919_s1 = inlined_call_operand.hbm [shape: bf16[128,128], index: 1, kind: input, shape index: {}]   ;;  %s920_s2 = inlined_call_operand.hbm [shape: bf16[128,128], index: 2, kind: input, shape index: {}]   ;;  %s921_s3 = inlined_call_operand.hbm [shape: f32[16,128], index: 3, kind: input, shape index: {}]   ;;  %s922_s4 = inlined_call_operand.hbm [shape: f32[128,128], index: 4, kind: input, shape index: {}]   ;;  %s923_s5 = inlined_call_operand.hbm [shape: f32[16,128], index: 5, kind: output, shape index: {}]  }
   0x1   :  { %11 = vsyncpa [#allocation6], 0 }
   0x2   :  { %12 = vsyncpa [#allocation9], 0 }
   0x3   :  { %13 = vsyncpa [#allocation4], 0  ;;  %s772_s18 = smov [#allocation5]   ;;  %s773_s20 = smov [#allocation8]  }
   0x4   :  { %s31_s19 = sshll.u32 %s772_s18, 4  ;;  %s55_s21 = sshll.u32 %s773_s20, 4  ;;  %s32_s19 = int_to_ptr.vmem [resolvable:$true] %s31_s19  ;;  %s814_s21 = int_to_ptr.vmem [resolvable:$true] %s55_s21 }
   0x5   :  { %s632_s24 = scalar_lea.hbm %s919_s1, 1024 }
   0x6   :  { %p633_p0 = scmp.ne.s32.totalorder %s919_s1, %s632_s24  ;;  %p636_p1 = scmp.lt.u32.totalorder %s632_s24, %s919_s1 }
   0x8   :  { %p638_p2 = pnand %p636_p1, %p633_p0 }
   0xa   :  { %641 = shalt.err (!%p638_p2)
}
   0xb   :  { %s642_s29 = scalar_lea.vmem %s32_s19, 1024  ;;  %p647_p4 = scmp.lt.s32.totalorder %s32_s19, %s32_s19 }
   0xc   :  { %p643_p3 = scmp.ne.s32.totalorder %s32_s19, %s642_s29  ;;  %p648_p5 = scmp.lt.s32.totalorder %s642_s29, %s642_s29 }
   0xe   :  { %p649_p6 = por %p648_p5, %p647_p4 }
  0x10   :  { %p650_p7 = pnand %p649_p6, %p643_p3 }
  0x12   :  { %653 = shalt.err (!%p650_p7)
}
  0x13   :  { %s774_s30 = smov 64   ;;  %s775_s6 = smov 4  }
  0x14   :  { %37 = dma.hbm_to_vmem [thread:$0]  %s919_s1, 1024, %s32_s19, [#allocation6], %s774_s30, %s774_s30, %s775_s6  }
  0x15   :  { %s654_s11 = scalar_lea.hbm %s921_s3, 256 }
  0x16   :  { %p655_p8 = scmp.ne.s32.totalorder %s921_s3, %s654_s11  ;;  %p658_p9 = scmp.lt.u32.totalorder %s654_s11, %s921_s3 }
  0x18   :  { %p660_p10 = pnand %p658_p9, %p655_p8 }
  0x1a   :  { %663 = shalt.err (!%p660_p10)
}
  0x1b   :  { %s664_s16 = scalar_lea.vmem %s814_s21, 256  ;;  %p669_p12 = scmp.lt.s32.totalorder %s814_s21, %s814_s21 }
  0x1c   :  { %p665_p11 = scmp.ne.s32.totalorder %s814_s21, %s664_s16  ;;  %p670_p13 = scmp.lt.s32.totalorder %s664_s16, %s664_s16 }
  0x1e   :  { %p671_p0 = por %p670_p13, %p669_p12 }
  0x20   :  { %p672_p1 = pnand %p671_p0, %p665_p11 }
  0x22   :  { %675 = shalt.err (!%p672_p1)
}
  0x23   :  { %s776_s1 = smov 128   ;;  %s777_s17 = smov 8  }
  0x24   :  { %61 = dma.hbm_to_vmem [thread:$0]  %s921_s3, 256, %s814_s21, [#allocation9], %s776_s1, %s776_s1, %s777_s17  }
  0x25   :  { %s778_s20 = smov [#allocation2]   ;;  %s779_s23 = smov [#allocation7]  }
  0x26   :  { %s19_s22 = sshll.u32 %s778_s20, 4  ;;  %s43_s24 = sshll.u32 %s779_s23, 4  ;;  %s20_s22 = int_to_ptr.vmem [resolvable:$true] %s19_s22  ;;  %s851_s24 = int_to_ptr.vmem [resolvable:$true] %s43_s24 }
  0x27   :  { %s676_s27 = scalar_lea.hbm %s918_s0, 128 }
  0x28   :  { %p677_p2 = scmp.ne.s32.totalorder %s918_s0, %s676_s27  ;;  %p680_p3 = scmp.lt.u32.totalorder %s676_s27, %s918_s0 }
  0x2a   :  { %p682_p4 = pnand %p680_p3, %p677_p2 }
  0x2c   :  { %685 = shalt.err (!%p682_p4)
}
  0x2d   :  { %s686_s3 = scalar_lea.vmem %s20_s22, 128  ;;  %p691_p6 = scmp.lt.s32.totalorder %s20_s22, %s20_s22 }
  0x2e   :  { %p687_p5 = scmp.ne.s32.totalorder %s20_s22, %s686_s3  ;;  %p692_p7 = scmp.lt.s32.totalorder %s686_s3, %s686_s3 }
  0x30   :  { %p693_p8 = por %p692_p7, %p691_p6 }
  0x32   :  { %p694_p9 = pnand %p693_p8, %p687_p5 }
  0x34   :  { %697 = shalt.err (!%p694_p9)
}
  0x35   :  { %25 = dma.hbm_to_vmem [thread:$0]  %s918_s0, 128, %s20_s22, [#allocation3], %s774_s30, %s774_s30, %s775_s6  }
  0x36   :  { %s698_s12 = scalar_lea.hbm %s920_s2, 1024 }
  0x37   :  { %p699_p10 = scmp.ne.s32.totalorder %s920_s2, %s698_s12  ;;  %p702_p11 = scmp.lt.u32.totalorder %s698_s12, %s920_s2 }
  0x39   :  { %p704_p12 = pnand %p702_p11, %p699_p10 }
  0x3b   :  { %707 = shalt.err (!%p704_p12)
}
  0x3c   :  { %s708_s18 = scalar_lea.vmem %s851_s24, 1024  ;;  %p713_p0 = scmp.lt.s32.totalorder %s851_s24, %s851_s24 }
  0x3d   :  { %p709_p13 = scmp.ne.s32.totalorder %s851_s24, %s708_s18  ;;  %p714_p1 = scmp.lt.s32.totalorder %s708_s18, %s708_s18 }
  0x3f   :  { %p715_p2 = por %p714_p1, %p713_p0 }
  0x41   :  { %p716_p3 = pnand %p715_p2, %p709_p13 }
  0x43   :  { %719 = shalt.err (!%p716_p3)
}
  0x44   :  { %49 = dma.hbm_to_vmem [thread:$0]  %s920_s2, 1024, %s851_s24, [#allocation6], %s774_s30, %s774_s30, %s775_s6  }
  0x45   :  { %s780_s20 = smov [#allocation10]   ;;  %s720_s26 = scalar_lea.hbm %s922_s4, 2048 }
  0x46   :  { %s67_s22 = sshll.u32 %s780_s20, 4  ;;  %p721_p4 = scmp.ne.s32.totalorder %s922_s4, %s720_s26  ;;  %s68_s22 = int_to_ptr.vmem [resolvable:$true] %s67_s22 }
  0x47   :  { %p724_p5 = scmp.lt.u32.totalorder %s720_s26, %s922_s4 }
  0x49   :  { %p726_p6 = pnand %p724_p5, %p721_p4 }
  0x4b   :  { %729 = shalt.err (!%p726_p6)
}
  0x4c   :  { %s730_s8 = scalar_lea.vmem %s68_s22, 2048  ;;  %p735_p8 = scmp.lt.s32.totalorder %s68_s22, %s68_s22 }
  0x4d   :  { %p731_p7 = scmp.ne.s32.totalorder %s68_s22, %s730_s8  ;;  %p736_p9 = scmp.lt.s32.totalorder %s730_s8, %s730_s8 }
  0x4f   :  { %p737_p10 = por %p736_p9, %p735_p8 }
  0x51   :  { %p738_p11 = pnand %p737_p10, %p731_p7 }
  0x53   :  { %741 = shalt.err (!%p738_p11)
}
  0x54   :  { %73 = dma.hbm_to_vmem [thread:$0]  %s922_s4, 2048, %s68_s22, [#allocation9], %s776_s1, %s776_s1, %s777_s17  }
  0x55   :  { %764 = dma.done.wait [#allocation3], 128  }
  0x56   :  { %765 = vsyncadd [#allocation3], 4294967168 }
  0x57   :  { %766 = dma.done.wait [#allocation6], 2048  }
  0x58   :  { %767 = vsyncadd [#allocation6], 4294965248 }
  0x59   :  { %768 = dma.done.wait [#allocation9], 2304  }
  0x5a   :  { %769 = vsyncadd [#allocation9], 4294964992  ;;  %v781_v0 = vmov 0.0   ;;  %vm782_vm0 = vmmov 0   ;;  %v611_v1 = vld [vmem:[#allocation5] sm:$0xff]   ;;  %v612_v2 = vld [vmem:[#allocation5 + $0x8] sm:$0xff]  }
  0x5b   :  { %492 = vmatprep.subr.bf16.mxu0 %v781_v0  ;;  %508 = vmatprep.mubr.msk.bf16.mxu0 %vm782_vm0, %v781_v0  ;;  %v613_v3 = vld [vmem:[#allocation5 + $0x10] sm:$0xff]   ;;  %v614_v4 = vld [vmem:[#allocation5 + $0x18] sm:$0xff]   ;;  %v620_v5 = vld [vmem:[#allocation7] sm:$0xff]   ;;  %s783_s4 = smov [#allocation11]  }
  0x5c   :  { %512 = vmatprep.subr.bf16.mxu1 %v781_v0  ;;  %528 = vmatprep.mubr.msk.bf16.mxu1 %vm782_vm0, %v781_v0  ;;  %v621_v6 = vld [vmem:[#allocation7 + $0x8] sm:$0xff]   ;;  %v615_v7 = vld [vmem:[#allocation5 + $0x20] sm:$0xff]   ;;  %v617_v9 = vld [vmem:[#allocation5 + $0x30] sm:$0xff]   ;;  %s423_s6 = sshll.u32 %s783_s4, 4  ;;  %s424_s6 = int_to_ptr.vmem [resolvable:$true] %s423_s6 }
  0x5d   :  { %493 = vmatpush3.bf16.msra.mxu0 %v611_v1  ;;  %513 = vmatpush3.bf16.msra.mxu1 %v620_v5  ;;  %v616_v8 = vld [vmem:[#allocation5 + $0x28] sm:$0xff]   ;;  %v618_v10 = vld [vmem:[#allocation5 + $0x38] sm:$0xff]   ;;  %v622_v12 = vld [vmem:[#allocation7 + $0x10] sm:$0xff]   ;;  %s742_s24 = scalar_lea.vmem %s424_s6, 256  ;;  %p747_p13 = scmp.lt.s32.totalorder %s424_s6, %s424_s6 }
  0x5e   :  { %494 = vmatprep.subr.bf16.mxu0 %v781_v0  ;;  %514 = vmatprep.subr.bf16.mxu1 %v781_v0  ;;  %v619_v11 = vld [vmem:[#allocation2] sm:$0xff]   ;;  %v624_v14 = vld [vmem:[#allocation7 + $0x20] sm:$0xff]   ;;  %v625_v15 = vld [vmem:[#allocation7 + $0x28] sm:$0xff]   ;;  %p743_p12 = scmp.ne.s32.totalorder %s424_s6, %s742_s24  ;;  %p748_p0 = scmp.lt.s32.totalorder %s742_s24, %s742_s24 }
  0x5f   :  { %v623_v13 = vld [vmem:[#allocation7 + $0x18] sm:$0xff]   ;;  %v626_v16 = vld [vmem:[#allocation7 + $0x30] sm:$0xff]   ;;  %v327_v20 = vld [vmem:[#allocation10 + $0x10] sm:$0xff] }
  0x60   :  { %v627_v17 = vld [vmem:[#allocation7 + $0x38] sm:$0xff]   ;;  %v325_v18 = vld [vmem:[#allocation10] sm:$0xff]  ;;  %v328_v22 = vld [vmem:[#allocation10 + $0x18] sm:$0xff]  ;;  %p749_p1 = por %p748_p0, %p747_p13 }
  0x61   :  { %495 = vmatpush3.bf16.msra.mxu0 %v612_v2  ;;  %515 = vmatpush3.bf16.msra.mxu1 %v621_v6  ;;  %v326_v19 = vld [vmem:[#allocation10 + $0x8] sm:$0xff]  ;;  %v571_v23 = vpack.c.bf16 %v328_v22, %v327_v20  ;;  %v329_v24 = vld [vmem:[#allocation10 + $0x20] sm:$0xff]  ;;  %v331_v27 = vld [vmem:[#allocation10 + $0x30] sm:$0xff] }
  0x62   :  { %496 = vmatprep.subr.bf16.mxu0 %v781_v0  ;;  %516 = vmatprep.subr.bf16.mxu1 %v781_v0  ;;  %v567_v21 = vpack.c.bf16 %v326_v19, %v325_v18  ;;  %v330_v25 = vld [vmem:[#allocation10 + $0x28] sm:$0xff]  ;;  %v332_v28 = vld [vmem:[#allocation10 + $0x38] sm:$0xff]  ;;  %v333_v30 = vld [vmem:[#allocation10 + $0x40] sm:$0xff]  ;;  %p750_p2 = pnand %p749_p1, %p743_p12 }
  0x63   :  { %v575_v26 = vpack.c.bf16 %v330_v25, %v329_v24  ;;  %v579_v29 = vpack.c.bf16 %v332_v28, %v331_v27  ;;  %v334_v31 = vld [vmem:[#allocation10 + $0x48] sm:$0xff]  ;;  %v335_v33 = vld [vmem:[#allocation10 + $0x50] sm:$0xff]  ;;  %v336_v34 = vld [vmem:[#allocation10 + $0x58] sm:$0xff] }
  0x64   :  { %v583_v32 = vpack.c.bf16 %v334_v31, %v333_v30  ;;  %v587_v35 = vpack.c.bf16 %v336_v34, %v335_v33  ;;  %v337_v36 = vld [vmem:[#allocation10 + $0x60] sm:$0xff]  ;;  %v338_v37 = vld [vmem:[#allocation10 + $0x68] sm:$0xff]  ;;  %v339_v54 = vld [vmem:[#allocation10 + $0x70] sm:$0xff] }
  0x65   :  { %497 = vmatpush3.bf16.msra.mxu0 %v613_v3  ;;  %517 = vmatpush3.bf16.msra.mxu1 %v622_v12  ;;  %v591_v38 = vpack.c.bf16 %v338_v37, %v337_v36  ;;  %v340_v55 = vld [vmem:[#allocation10 + $0x78] sm:$0xff]  ;;  %v321_v57 = vld [vmem:[#allocation8] sm:$0xff] }
  0x66   :  { %498 = vmatprep.subr.bf16.mxu0 %v781_v0  ;;  %518 = vmatprep.subr.bf16.mxu1 %v781_v0  ;;  %v595_v56 = vpack.c.bf16 %v340_v55, %v339_v54  ;;  %v322_v59 = vld [vmem:[#allocation8 + $0x8] sm:$0xff] }
  0x69   :  { %499 = vmatpush3.bf16.msra.mxu0 %v614_v4  ;;  %519 = vmatpush3.bf16.msra.mxu1 %v623_v13 }
  0x6a   :  { %500 = vmatprep.subr.bf16.mxu0 %v781_v0  ;;  %520 = vmatprep.subr.bf16.mxu1 %v781_v0 }
  0x6d   :  { %501 = vmatpush3.bf16.msra.mxu0 %v615_v7  ;;  %521 = vmatpush3.bf16.msra.mxu1 %v624_v14 }
  0x6e   :  { %502 = vmatprep.subr.bf16.mxu0 %v781_v0  ;;  %522 = vmatprep.subr.bf16.mxu1 %v781_v0 }
  0x71   :  { %503 = vmatpush3.bf16.msra.mxu0 %v616_v8  ;;  %523 = vmatpush3.bf16.msra.mxu1 %v625_v15 }
  0x72   :  { %504 = vmatprep.subr.bf16.mxu0 %v781_v0  ;;  %524 = vmatprep.subr.bf16.mxu1 %v781_v0 }
  0x75   :  { %505 = vmatpush3.bf16.msra.mxu0 %v617_v9  ;;  %525 = vmatpush3.bf16.msra.mxu1 %v626_v16 }
  0x76   :  { %506 = vmatprep.subr.bf16.mxu0 %v781_v0  ;;  %526 = vmatprep.subr.bf16.mxu1 %v781_v0 }
  0x79   :  { %507 = vmatpush3.bf16.msra.mxu0 %v618_v10  ;;  %527 = vmatpush3.bf16.msra.mxu1 %v627_v17 }
  0x7a   :  { %568 = vmatprep.subr.bf16.mxu0 %v567_v21 }
  0x7c   :  { %509 = vmatmul.mubr.bf16.vlgmr.msra.gmra.mrb[0].mxu0 %v619_v11 }
  0x7d   :  { %570 = vmatpush3.bf16.msra.mxu0 %v567_v21 }
  0x7e   :  { %572 = vmatprep.subr.bf16.mxu0 %v571_v23 }
  0x81   :  { %574 = vmatpush3.bf16.msra.mxu0 %v571_v23 }
  0x82   :  { %576 = vmatprep.subr.bf16.mxu0 %v575_v26 }
  0x85   :  { %578 = vmatpush3.bf16.msra.mxu0 %v575_v26 }
  0x86   :  { %580 = vmatprep.subr.bf16.mxu0 %v579_v29 }
  0x89   :  { %582 = vmatpush3.bf16.msra.mxu0 %v579_v29 }
  0x8a   :  { %584 = vmatprep.subr.bf16.mxu0 %v583_v32 }
  0x8d   :  { %586 = vmatpush3.bf16.msra.mxu0 %v583_v32 }
  0x8e   :  { %588 = vmatprep.subr.bf16.mxu0 %v587_v35 }
  0x91   :  { %590 = vmatpush3.bf16.msra.mxu0 %v587_v35 }
  0x92   :  { %592 = vmatprep.subr.bf16.mxu0 %v591_v38 }
  0x95   :  { %594 = vmatpush3.bf16.msra.mxu0 %v591_v38 }
  0x96   :  { %596 = vmatprep.subr.bf16.mxu0 %v595_v56 }
  0x99   :  { %598 = vmatpush3.bf16.msra.mxu0 %v595_v56 }
 0x14f   :  { %v196_v39 = vpop.f32.mrb[0].mxu0 }
 0x150   :  { %v205_v40 = vmin.f32 %v196_v39, 0.0  ;;  %v510_v41 = vpop.f32.mrb[1].mxu0  ;;  %vm203_vm1 = vcmp.gt.f32.partialorder %v196_v39, 0.0 }
 0x151   :  { %v199_v42 = vpop.f32.mrb[2].mxu0 }
 0x152   :  { %v207_v43 = vmul.f32 1.442695, %v205_v40  ;;  %v206_v44 = vmin.f32 %v199_v42, 0.0  ;;  %v511_v45 = vpop.f32.mrb[3].mxu0  ;;  %vm204_vm2 = vcmp.gt.f32.partialorder %v199_v42, 0.0 }
 0x154   :  { %628 = vpow2.f32 %v207_v43  ;;  %v209_v46 = vmul.f32 1.442695, %v206_v44 }
 0x156   :  { %630 = vpow2.f32 %v209_v46 }
 0x15e   :  { %v629_v47 = vpop.eup %628 }
 0x15f   :  { %v446_v48 = vadd.f32 -1.0, %v629_v47 }
 0x160   :  { %v631_v49 = vpop.eup %630 }
 0x161   :  { %v447_v50 = vadd.f32 -1.0, %v631_v49  ;;  %v213_v51 = vsel %vm203_vm1, %v196_v39, %v446_v48 }
 0x163   :  { %v214_v52 = vsel %vm204_vm2, %v199_v42, %v447_v50 }
 0x164   :  { %v215_v53 = vpack.c.bf16 %v214_v52, %v213_v51 }
 0x166   :  { %529 = vmatmul.mubr.bf16.vlgmr.msra.gmra.mrb[0].mxu1 %v215_v53 }
 0x239   :  { %v314_v58 = vpop.f32.mrb[0].mxu1 }
 0x23a   :  { %v323_v60 = vmul.f32 %v321_v57, %v314_v58  ;;  %v530_v61 = vpop.f32.mrb[1].mxu1 }
 0x23b   :  { %v317_v62 = vpop.f32.mrb[2].mxu1 }
 0x23c   :  { %v324_v63 = vmul.f32 %v322_v59, %v317_v62  ;;  %v531_v0 = vpop.f32.mrb[3].mxu1  ;;  %564 = vmatprep.mubr.f32.mxu0 %v323_v60 }
 0x23e   :  { %565 = vmatmul.mubr.f32.vlgmr.msra.gmra.mrb[4].mxu0 %v324_v63 }
 0x311   :  { %v566_v1 = vpop.f32.mrb[4].mxu0 }
 0x312   :  { %417 = vst [vmem:[#allocation11 + $0x8] sm:$0xff] %v566_v1  ;;  %v407_v2 = vpop.f32.mrb[5].mxu0 }
 0x313   :  { %416 = vst [vmem:[#allocation11] sm:$0xff] %v407_v2 }
 0x314   :  { %753 = shalt.err (!%p750_p2)
}
 0x315   :  { %s754_s9 = scalar_lea.hbm %s923_s5, 256 }
 0x316   :  { %p755_p3 = scmp.ne.s32.totalorder %s923_s5, %s754_s9  ;;  %p758_p4 = scmp.lt.u32.totalorder %s754_s9, %s923_s5 }
 0x318   :  { %p760_p5 = pnand %p758_p4, %p755_p3 }
 0x31a   :  { %763 = shalt.err (!%p760_p5)
}
 0x31b   :  { %429 = dma.vmem_to_hbm [thread:$0]  %s424_s6, 256, %s923_s5, [#allocation4], %s776_s1, %s776_s1, %s777_s17  }
 0x31c   :  { %770 = dma.done.wait [#allocation4], 256  }
 0x31d   :  { %771 = vsyncadd [#allocation4], 4294967040 }
 0x31e   :  { %433 = vsyncpa [#allocation3], 1 }
 0x31f   :  { %434 = vsyncpa [#allocation6], 1 }
 0x320   :  { %435 = vsyncpa [#allocation9], 1 }
 0x321   :  { %436 = vsyncpa [#allocation4], 1 }

</bundles_post_ra>
